<compile_context>
chip_gen: v7x
topology: tpu7x:2x2x1
jax: 0.10.0
libtpu: 0.0.40
codegen_flags: <defaults>
</compile_context>

<pallas_src>
import jax
import jax.numpy as jnp
from jax.experimental import pallas as pl
from jax.experimental.pallas import tpu as pltpu


# ----------------------------- kernel bodies ---------------------------------

def _softmax_mul(att_data, logits, out_dtype):
    """Stable softmax over channel axis (axis=1) in f32, multiply in native dtype."""
    logits = logits.astype(jnp.float32)
    m = jnp.max(logits, axis=1, keepdims=True)
    e = jnp.exp(logits - m)
    denom = jnp.sum(e, axis=1, keepdims=True)
    # Exact reciprocal of a tiny (bt, 1, tl) array, then broadcast multiply.
    att_softmax = (e * pl.reciprocal(denom, approx=False)).astype(out_dtype)
    return att_data * att_softmax


def attention_kernel_split(data_ref, logits_ref, o_ref):
    # data_ref / logits_ref: (bt, half, tl) aligned half-channel blocks.
    o_ref[...] = _softmax_mul(data_ref[...], logits_ref[...], o_ref.dtype)


def attention_kernel_fused(x_ref, o_ref):
    # x_ref: (bt, C, tl) full-channel block (fallback when half is not sublane-aligned).
    half = o_ref.shape[1]
    x = x_ref[...]
    o_ref[...] = _softmax_mul(x[:, :half, :], x[:, half:, :], o_ref.dtype)


# ----------------------------- tiling heuristics ------------------------------

def _choose_tiles(B, C, L, itemsize, *, target_block_bytes=2 * 1024 * 1024):
    """Pick (bt, tl): lane-dense length tile + batch packing, ~target bytes/step."""
    row_bytes = max(C * itemsize, 1)

    # Length tile: full extent when the whole (C, L) slab is small, otherwise a
    # multiple of 128 sized near the byte target.
    if C * L * itemsize <= target_block_bytes:
        tl = L
    else:
        tl = max(128, (target_block_bytes // row_bytes) // 128 * 128)
        tl = min(tl, L)  # tl < 128 only possible when L < 128 -> full extent

    # Batch tile: pack batch rows (largest divisor of B within the byte cap).
    blk_bytes = max(C * tl * itemsize, 1)
    bt_cap = max(1, target_block_bytes // blk_bytes)
    bt = 1
    for d in range(1, B + 1):
        if B % d == 0 and d <= bt_cap:
            bt = d

    # v7x: never collapse to a (1,1) grid, otherwise one TensorCore idles.
    n_len = -(-L // tl)
    if (B // bt) * n_len == 1:
        if B >= 2:
            for d in range(B // 2, 0, -1):      # largest proper divisor -> >=2 batch programs
                if B % d == 0:
                    bt = d
                    break
        elif L >= 256:
            tl = max(128, (L // 2) // 128 * 128)  # >=2 length programs
    return bt, tl


def _vmem_budget_bytes(bt, C, half, tl, itemsize):
    """2x double-buffered (in + out) blocks + f32 intermediates, sublane-padding aware."""
    pack = max(1, 4 // itemsize)   # elements per 32-bit sublane word
    sub = 8 * pack                 # sublane granularity in elements
    c_pad = -(-C // sub) * sub
    h_pad = -(-half // sub) * sub
    h_pad32 = -(-half // 8) * 8    # f32 intermediates
    in_blk = bt * c_pad * tl * itemsize
    out_blk = bt * h_pad * tl * itemsize
    interm = 3 * bt * h_pad32 * tl * 4   # logits, exp, softmax in f32
    return 2 * (in_blk + out_blk) + interm


# ----------------------------- public wrapper ---------------------------------

def attention_layer(x):
    """Pallas implementation of AttentionLayer.forward for x of shape (B, C, L)."""
    B, C, L = x.shape
    assert C % 2 == 0, "channel dimension must be even"
    half = C // 2
    itemsize = x.dtype.itemsize

    bt, tl = _choose_tiles(B, C, L, itemsize)
    grid = (B // bt, pl.cdiv(L, tl))

    # Split-input path only when the half-channel block is sublane-aligned for
    # this dtype (8 rows per 32-bit word of sublane packing).
    sub = 8 * max(1, 4 // itemsize)
    use_split = (half % sub == 0)

    budget = _vmem_budget_bytes(bt, C, half, tl, itemsize)
    vmem_limit = int(min(48 * 1024 * 1024, max(2 * budget, 16 * 1024 * 1024)))

    cost = pl.CostEstimate(
        flops=int(6 * B * half * L),                    # sub, mul, add, cmp per element
        transcendentals=int(B * half * L),              # one exp per logits element
        bytes_accessed=int((C + half) * B * L * itemsize),
    )

    out_shape = jax.ShapeDtypeStruct((B, half, L), x.dtype)
    out_spec = pl.BlockSpec((bt, half, tl), lambda b, l: (b, 0, l))

    if use_split:
        kernel = attention_kernel_split
        in_specs = [
            pl.BlockSpec((bt, half, tl), lambda b, l: (b, 0, l)),  # data half
            pl.BlockSpec((bt, half, tl), lambda b, l: (b, 1, l)),  # logits half
        ]
        args = (x, x)
    else:
        kernel = attention_kernel_fused
        in_specs = [pl.BlockSpec((bt, C, tl), lambda b, l: (b, 0, l))]
        args = (x,)

    return pl.pallas_call(
        kernel,
        out_shape=out_shape,
        grid_spec=pltpu.PrefetchScalarGridSpec(
            num_scalar_prefetch=0,
            grid=grid,
            in_specs=in_specs,
            out_specs=out_spec,
        ),
        compiler_params=pltpu.CompilerParams(
            dimension_semantics=("parallel", "parallel"),
            vmem_limit_bytes=vmem_limit,
        ),
        cost_estimate=cost,
    )(*args)


def attention_layer_ref(x):
    """Pure-JAX reference mirroring the PyTorch module (softmax in f32 for stability)."""
    C = x.shape[1]
    half = C // 2
    att_data = x[:, :half, :]
    att_logits = x[:, half:, :]
    att_softmax = jax.nn.softmax(att_logits.astype(jnp.float32), axis=1).astype(x.dtype)
    return att_data * att_softmax


if __name__ == "__main__":
    key = jax.random.PRNGKey(0)

    ok = True
    # (2,8,16) f32  -> half=4 not sublane-aligned -> fused path, grid split on batch.
    # (4,16,384) f32 -> half=8 aligned            -> split path, batch-packed.
    # (2,32,256) bf16 -> half=16 aligned (bf16)   -> split path, bf16 multiply.
    cases = [
        ((2, 8, 16), jnp.float32, 1e-5),
        ((4, 16, 384), jnp.float32, 1e-5),
        ((2, 32, 256), jnp.bfloat16, 2e-2),
    ]
    for (B, C, L), dtype, tol in cases:
        key, sub = jax.random.split(key)
        x = jax.random.normal(sub, (B, C, L), dtype=jnp.float32).astype(dtype)

        out = jax.block_until_ready(attention_layer(x))
        ref = attention_layer_ref(x)

        ok &= out.shape == (B, C // 2, L)
        ok &= bool(jnp.allclose(out.astype(jnp.float32), ref.astype(jnp.float32),
                                atol=tol, rtol=tol))

    assert ok
    print("KERNEL_OK")
</pallas_src>

<mosaic_0001>
module attributes {stable_mosaic.version = 11 : i64} {
  func.func @attention_kernel_fused(%arg0: i32, %arg1: i32, %arg2: memref<1x8x16xf32, #tpu.memory_space<vmem>>, %arg3: memref<1x4x16xf32, #tpu.memory_space<vmem>>) attributes {dimension_semantics = [#tpu.dimension_semantics<parallel>, #tpu.dimension_semantics<parallel>], iteration_bounds = array<i64: 2, 1>, scalar_prefetch = 0 : i64, scratch_operands = 0 : i64, tpu.core_type = #tpu.core_type<tc>, window_params = [{transform_indices = @transform_0, window_bounds = array<i64: 1, 8, 16>}, {transform_indices = @transform_1, window_bounds = array<i64: 1, 4, 16>}]} {
    %c0 = arith.constant 0 : index
    %c0_0 = arith.constant 0 : index
    %c0_1 = arith.constant 0 : index
    %0 = vector.load %arg2[%c0, %c0_0, %c0_1] : memref<1x8x16xf32, #tpu.memory_space<vmem>>, vector<1x8x16xf32>
    %1 = vector.extract_strided_slice %0 {offsets = [0, 0, 0], sizes = [1, 4, 16], strides = [1, 1, 1]} : vector<1x8x16xf32> to vector<1x4x16xf32>
    %2 = vector.extract_strided_slice %0 {offsets = [0, 4, 0], sizes = [1, 4, 16], strides = [1, 1, 1]} : vector<1x8x16xf32> to vector<1x4x16xf32>
    %cst = arith.constant dense<0xFF800000> : vector<1x16xf32>
    %3 = vector.multi_reduction <maximumf>, %2, %cst [1] : vector<1x4x16xf32> to vector<1x16xf32>
    %4 = vector.shape_cast %3 : vector<1x16xf32> to vector<1x1x16xf32>
    %5 = vector.broadcast %4 : vector<1x1x16xf32> to vector<1x4x16xf32>
    %6 = arith.subf %2, %5 : vector<1x4x16xf32>
    %7 = math.exp %6 : vector<1x4x16xf32>
    %cst_2 = arith.constant dense<0.000000e+00> : vector<1x16xf32>
    %8 = vector.multi_reduction <add>, %7, %cst_2 [1] : vector<1x4x16xf32> to vector<1x16xf32>
    %9 = vector.shape_cast %8 : vector<1x16xf32> to vector<1x1x16xf32>
    %10 = tpu.reciprocal %9 : vector<1x1x16xf32> -> vector<1x1x16xf32>
    %11 = vector.broadcast %10 : vector<1x1x16xf32> to vector<1x4x16xf32>
    %12 = arith.mulf %7, %11 : vector<1x4x16xf32>
    %13 = arith.mulf %1, %12 : vector<1x4x16xf32>
    %c0_3 = arith.constant 0 : index
    %c0_4 = arith.constant 0 : index
    %c0_5 = arith.constant 0 : index
    %14 = vector.load %arg3[%c0_3, %c0_4, %c0_5] : memref<1x4x16xf32, #tpu.memory_space<vmem>>, vector<1x4x16xf32>
    tpu.vector_store %arg3[%c0_3, %c0_4, %c0_5], %13 {strides = array<i32>} : memref<1x4x16xf32, #tpu.memory_space<vmem>>, vector<1x4x16xf32>,
    return
  }
  func.func @transform_0(%arg0: i32, %arg1: i32) -> (i32, i32, i32) {
    %c0_i32 = arith.constant 0 : i32
    %c0_i32_0 = arith.constant 0 : i32
    return %arg0, %c0_i32, %arg1 : i32, i32, i32
  }
  func.func @transform_1(%arg0: i32, %arg1: i32) -> (i32, i32, i32) {
    %c0_i32 = arith.constant 0 : i32
    %c0_i32_0 = arith.constant 0 : i32
    return %arg0, %c0_i32, %arg1 : i32, i32, i32
  }
}

</mosaic_0001>

<bundles_post_ra>
// kernel: tpu_custom_call.1
= control target key start
LH: loop header
LB: loop body
LE: loop exit
PB: predicated region body
PF: predicated region fallthrough
CT: control target
= control target key end

     0   :  { %6 = vsyncpa [#allocation3], 0  ;;  %s654_s0 = inlined_call_operand.hbm [shape: f32[2,8,16], index: 0, kind: input, shape index: {}]   ;;  %s655_s1 = inlined_call_operand.hbm [shape: f32[2,4,16], index: 1, kind: output, shape index: {}]  }
   0x1   :  { %8 = vsyncpa [#allocation3 + $0x1], 0 }
   0x2   :  { %9 = vsyncpa [#allocation4], 0 }
   0x3   :  { %11 = vsyncpa [#allocation4 + $0x1], 0  ;;  %s479_s6 = smov 0   ;;  %s481_s7 = smov 0  }
   0x4   :  { %s483_s8 = smov 0   ;;  %s485_s9 = smov 0  }
   0x5   :  { %s487_s10 = smov 0   ;;  %s489_s11 = smov 0  }
   0x6 LB: > { %s274_s12 = sadd.s32 4294967295, %s465_s11   ;;  %s275_s13 = sadd.s32 4294967294, %s465_s11   ;;  %s465_s11 = sphi %s489_s11, %s17_s11   ;;  %s461_s10 = sphi %s487_s10, %s671_s10   ;;  %s457_s9 = sphi %s485_s9, %s670_s9   ;;  %s453_s8 = sphi %s483_s8, %s669_s8   ;;  %s449_s7 = sphi %s481_s7, %s668_s7   ;;  %s445_s6 = sphi %s479_s6, %s667_s6  }
   0x7   : > { %s29_s14 = sadd.s32 1, %s461_s10  ;;  %s38_s15 = sadd.s32 1, %s453_s8 }
   0x8   : > { %p31_p0 = scmp.ge.s32.totalorder %s29_s14, 2  ;;  %p45_p1 = scmp.ne.s32.totalorder %s453_s8, %s449_s7 }
   0x9   : > { %p46_p2 = scmp.eq.s32.totalorder %s465_s11, 0  ;;  %p51_p3 = scmp.ne.s32.totalorder %s449_s7, %s445_s6 }
   0xa   : > { %s673_s14 = smov (%p31_p0, %s29_s14), 0  ;;  %p52_p5 = scmp.eq.s32.totalorder %s274_s12, 0 }
   0xb   : > { %p520_p4 = por %p46_p2, %p45_p1  ;;  %s33_s17 = ssub.s32 %s461_s10, %s673_s14 }
   0xc   : > { %p77_p6 = scmp.eq.s32.totalorder %s274_s12, 1  ;;  %p36_p7 = scmp.eq.s32.totalorder %s33_s17, 0 }
   0xd   : > { %p526_p8 = por %p52_p5, %p51_p3  ;;  %p83_p10 = scmp.eq.s32.totalorder %s275_s13, 1 }
   0xe   : > { %p530_p9 = por %p77_p6, %p45_p1  ;;  %p299_p13 = scmp.lt.s32.totalorder %s465_s11, 2 }
   0xf   : > { %s535_s20 = scalar_select %p36_p7, %s453_s8, %s38_s15  }
  0x10   : > { %s659_s19 = scalar_select %p530_p9, 1, 0 }
  0x11   : > { %p537_p11 = por %p83_p10, %p51_p3  ;;  %s103_s22 = sand.u32 1, %s453_s8  }
  0x12   : > { %s278_s23 = sshll.u32 %s103_s22, 3  ;;  %s279_s24 = sshll.u32 %s461_s10, 7 }
  0x13   : > { %s660_s21 = scalar_select %p537_p11, 1, 0 }
  0x14   : > { %s548_s27 = scalar_lea.hbm %s654_s0, %s279_s24  ;;  %s107_s28 = scalar_lea.vmem [#allocation2], %s278_s23 }
  0x15   : > { %s115_s29 = sshll.u32 %s107_s28, 4  ;;  %p554_p0 = pnand %p299_p13, %p520_p4  ;;  %s550_s29 = int_to_ptr.vmem [resolvable:$true] %s115_s29 }
  0x16   : > { %s104_s2 = scalar_lea.sflag [#allocation3], %s103_s22  ;;  %s353_s3 = scalar_lea.hbm %s548_s27, 128 }
  0x17   : > { %p354_p3 = scmp.ne.s32.totalorder %s548_s27, %s353_s3  ;;  %p355_p5 = pneg %p554_p0 }
  0x18   : > { %s358_s12 = scalar_lea.hbm %s654_s0, 256  ;;  %p359_p4 = scmp.lt.u32.totalorder %s548_s27, %s654_s0 }
  0x19   : > { %p356_p6 = pnand %p355_p5, %p354_p3  ;;  %p360_p10 = scmp.lt.u32.totalorder %s358_s12, %s353_s3 }
  0x1a   : > { %p362_p12 = scmp.lt.u32.totalorder %s353_s3, %s548_s27 }
  0x1b   : > { %p357_p7 = pneg %p356_p6  ;;  %p361_p13 = por %p360_p10, %p359_p4 }
  0x1d   : > { %p363_p1 = por %p362_p12, %p361_p13 }
  0x1f   : > { %p364_p2 = pnand %p363_p1, %p357_p7 }
  0x21   : > { %367 = shalt.err (!%p364_p2)
}
  0x22   : > { %s368_s16 = scalar_lea.vmem %s550_s29, 128  ;;  %s467_s17 = smov [#allocation2]  }
  0x23   : > { %p369_p3 = scmp.ne.s32.totalorder %s550_s29, %s368_s16  ;;  %s373_s22 = sshll.u32 %s467_s17, 4  ;;  %s374_s22 = int_to_ptr.vmem [resolvable:$false] %s373_s22 }
  0x24   : > { %s375_s23 = scalar_lea.vmem %s374_s22, 256  ;;  %p376_p9 = scmp.lt.s32.totalorder %s550_s29, %s374_s22 }
  0x25   : > { %p371_p6 = pnand %p369_p3, %p355_p5  ;;  %p377_p4 = scmp.lt.s32.totalorder %s375_s23, %s368_s16 }
  0x27   : > { %p372_p11 = pneg %p371_p6  ;;  %p378_p10 = por %p377_p4, %p376_p9 }
  0x29   : > { %p379_p12 = pnand %p378_p10, %p372_p11 }
  0x2b   : > { %382 = shalt.err (!%p379_p12)
}
  0x2c   : > { %294 = dma.hbm_to_vmem [thread:$0]  (!%p554_p0), %s548_s27, 128, %s550_s29, %s104_s2  }
  0x2d   : > { %p662_p1 = scmp.lt.s32.totalorder %s465_s11, 3  ;;  %p663_p2 = scmp.ge.s32.totalorder %s465_s11, 1 }
  0x2f   : > { %p121_p5 = pnand %p663_p2, %p662_p1 }
  0x30   : > { %s590_s24 = sand.u32 (!%p121_p5), 1, %s449_s7  }
  0x31   : > { %124 = sbr.rel (%p121_p5) target bundleno = 132 (0x84), region = 24  ;;  %s281_s25 = sshll.u32 (!%p121_p5), %s590_s24, 3 }
  0x32   : > { %s127_s26 = scalar_lea.sflag (!%p121_p5), [#allocation3], %s590_s24  ;;  %s130_s28 = scalar_lea.vmem (!%p121_p5), [#allocation2], %s281_s25 }
  0x38   : > { %436 = dma.done.wait (%p526_p8), %s127_s26, 128  }
  0x39   : > { %438 = vsyncadd (%p526_p8), %s127_s26, 4294967168  ;;  %vm150_vm0 = vcmask 130052   ;;  %v149_v0 = vld [vmem:[%s130_s28] sm:$0xff]  ;;  %vm164_vm1 = vcmask 125952   ;;  %s282_s18 = sshll.u32 %s590_s24, 2  ;;  %s284_s30 = sshll.u32 %s457_s9, 6 }
  0x3a   : > { %v151_v1 = vsel %vm150_vm0, %v149_v0, -inf  ;;  %s148_s27 = scalar_lea.vmem [#allocation5], %s282_s18  ;;  %s606_s4 = scalar_lea.hbm %s655_s1, %s284_s30 }
  0x3b   : > { %v152_v2 = vrot.slane %v151_v1, 4  ;;  %s194_s29 = sshll.u32 %s148_s27, 4  ;;  %s180_s5 = scalar_lea.sflag [#allocation4], %s590_s24  ;;  %s601_s29 = int_to_ptr.vmem [resolvable:$true] %s194_s29 }
  0x3c   : > { %s383_s12 = scalar_lea.vmem %s601_s29, 64  ;;  %p664_p9 = scmp.ne.s32.totalorder %s659_s19, 0 }
  0x3d   : > { %v153_v3 = vmax.f32 %v151_v1, %v152_v2  ;;  %p384_p8 = scmp.ne.s32.totalorder %s601_s29, %s383_s12  ;;  %s468_s9 = smov [#allocation5]  }
  0x3e   : > { %s387_s13 = sshll.u32 %s468_s9, 4  ;;  %s388_s13 = int_to_ptr.vmem [resolvable:$false] %s387_s13 }
  0x3f   : > { %v154_v4 = vrot.slane %v153_v3, 2  ;;  %p385_p11 = pnand %p384_p8, %p664_p9  ;;  %s389_s15 = scalar_lea.vmem %s388_s13, 128 }
  0x40   : > { %p390_p7 = scmp.lt.s32.totalorder %s601_s29, %s388_s13  ;;  %p391_p13 = scmp.lt.s32.totalorder %s389_s15, %s383_s12 }
  0x41   : > { %v155_v5 = vmax.f32 %v153_v3, %v154_v4  ;;  %p386_p0 = pneg %p385_p11 }
  0x42   : > { %p392_p3 = por %p391_p13, %p390_p7 }
  0x43   : > { %v156_v6 = vrot.slane %v155_v5, 1 }
  0x44   : > { %p393_p6 = pnand %p392_p3, %p386_p0 }
  0x45   : > { %v157_v7 = vmax.f32 %v155_v5, %v156_v6 }
  0x47   : > { %v158_v8 = vsub.f32 %v149_v0, %v157_v7 }
  0x49   : > { %v159_v9 = vmul.f32 1.442695, %v158_v8 }
  0x4b   : > { %349 = vpow2.f32 %v159_v9 }
  0x55   : > { %v350_v10 = vpop.eup %349 }
  0x56   : > { %v162_v11 = vrot.slane %v350_v10, 4 }
  0x58   : > { %v165_v12 = vsel %vm164_vm1, %v162_v11, 0.0 }
  0x59   : > { %v166_v13 = vrot.slane %v165_v12, 4 }
  0x5b   : > { %v167_v14 = vadd.f32 %v166_v13, %v165_v12 }
  0x5d   : > { %v168_v15 = vrot.slane %v167_v14, 2 }
  0x5f   : > { %v169_v16 = vadd.f32 %v168_v15, %v167_v14 }
  0x61   : > { %v170_v17 = vrot.slane %v169_v16, 1 }
  0x63   : > { %v171_v18 = vadd.f32 %v170_v17, %v169_v16 }
  0x65   : > { %351 = vrcp.f32 %v171_v18 }
  0x6f   : > { %v352_v19 = vpop.eup %351 }
  0x70   : > { %v173_v20 = vmul.f32 %v352_v19, %v350_v10 }
  0x72   : > { %v175_v21 = vrot.slane %v173_v20, 4 }
  0x74   : > { %v177_v22 = vmul.f32 %v175_v21, %v149_v0 }
  0x76   : > { %178 = vst.msk [vmem:[%s148_s27] sm:$0xf] %vm164_vm1, %v177_v22 }
  0x77   : > { %396 = shalt.err (!%p393_p6)
}
  0x78   : > { %s397_s16 = scalar_lea.hbm %s606_s4, 64  ;;  %s401_s23 = scalar_lea.hbm %s655_s1, 128 }
  0x79   : > { %p398_p4 = scmp.ne.s32.totalorder %s606_s4, %s397_s16  ;;  %p402_p1 = scmp.lt.u32.totalorder %s606_s4, %s655_s1 }
  0x7a   : > { %p403_p2 = scmp.lt.u32.totalorder %s401_s23, %s397_s16  ;;  %p405_p8 = scmp.lt.u32.totalorder %s397_s16, %s606_s4 }
  0x7b   : > { %p399_p10 = pnand %p398_p4, %p664_p9 }
  0x7c   : > { %p404_p5 = por %p403_p2, %p402_p1 }
  0x7d   : > { %p400_p12 = pneg %p399_p10 }
  0x7e   : > { %p406_p11 = por %p405_p8, %p404_p5 }
  0x80   : > { %p407_p0 = pnand %p406_p11, %p400_p12 }
  0x82   : > { %410 = shalt.err (!%p407_p0)
}
  0x83   : > { %289 = dma.vmem_to_hbm [thread:$0]  (%p664_p9), %s601_s29, 64, %s606_s4, %s180_s5  }
  0x84 PF: > { %s206_s26 = sand.u32 1, %s445_s6   ;;  %p665_p7 = scmp.ne.s32.totalorder %s660_s21, 0 }
  0x85   : > { %p666_p13 = scmp.ge.s32.totalorder %s465_s11, 2  ;;  %s207_s28 = scalar_lea.sflag [#allocation4], %s206_s26 }
  0x87   : > { %p296_p3 = pnand %p666_p13, %p665_p7 }
  0x89   : > { %440 = dma.done.wait (!%p296_p3), %s207_s28, 64  }
  0x8a   : > { %442 = vsyncadd (!%p296_p3), %s207_s28, 4294967232  ;;  %s17_s11 = sadd.s32 1, %s465_s11   ;;  %s667_s6 = smov %s449_s7 }
  0x8b   : > { %p14_p6 = scmp.ge.s32.totalorder %s17_s11, 4   ;;  %s668_s7 = smov %s453_s8 }
  0x8c   : > { %s669_s8 = smov %s535_s20  ;;  %s670_s9 = smov %s461_s10 }
  0x8d   : > { %s671_s10 = smov %s673_s14  ;;  %16 = sbr.rel (!%p14_p6) target bundleno = 6 (0x6), region = 69 }
  0x94   :  { %212 = vsyncpa [#allocation3], 1 }
  0x95   :  { %214 = vsyncpa [#allocation3 + $0x1], 1 }
  0x96   :  { %215 = vsyncpa [#allocation4], 1 }
  0x97   :  { %217 = vsyncpa [#allocation4 + $0x1], 1 }

</bundles_post_ra>
